<compile_context>
chip_gen: v6e
topology: v6e:2x2x1
jax: 0.10.0
libtpu: 0.0.40
codegen_flags: <defaults>
</compile_context>

<pallas_src>
import jax
import jax.numpy as jnp
from jax.experimental import pallas as pl
from jax.experimental.pallas import tpu as pltpu


def moe_kernel(x_ref, wg_ref, bg_ref, w1_ref, b1_ref, w2_ref, b2_ref, out_ref):
    """Single grid step: static (unrolled) loop over features, fused-expert math."""
    num_features = x_ref.shape[0]
    E = wg_ref.shape[-1]
    EH = w1_ref.shape[-1]
    H = EH // E

    # expert -> lane one-hot map, built once in-kernel (VPU compares, free under
    # the MXU); avoids a dedicated HBM input + its double-buffered VMEM copy.
    lane = jax.lax.broadcasted_iota(jnp.int32, (E, EH), 1)
    row = jax.lax.broadcasted_iota(jnp.int32, (E, EH), 0)
    expand = ((lane >= row * H) & (lane < (row + 1) * H)).astype(jnp.float32)  # (E, E*H)

    acc = jnp.zeros(out_ref.shape, jnp.float32)                   # (B, O_pad) f32 accumulator
    # TODO(synk): at production F / weight sizes, switch to grid=(F,) with an
    # output-resident accumulator (@pl.when(pid==0) init, "arbitrary" F axis)
    # and stream per-feature fused weights instead of this unrolled loop.

    for f in range(num_features):                                 # F small & static -> unrolled
        x = x_ref[f]                                              # (B, D) bf16

        # --- gate: Linear + softmax; f32 elementwise, EUP reciprocal ---------
        logits = jnp.dot(x, wg_ref[f], preferred_element_type=jnp.float32) + bg_ref[f]
        logits = logits - jnp.max(logits, axis=-1, keepdims=True)
        p = jnp.exp(logits)
        gate = p * pl.reciprocal(jnp.sum(p, axis=-1, keepdims=True), approx=True)  # (B, E) f32

        # --- all experts' first layer: one lane-dense bf16 MXU matmul --------
        h = jnp.dot(x, w1_ref[f], preferred_element_type=jnp.float32) + b1_ref[f]
        h = jnp.maximum(h, 0.0)                                   # (B, E*H) f32

        # Broadcast gate over each expert's H lane-slice via a tiny f32 matmul.
        gate_b = jnp.dot(gate, expand, preferred_element_type=jnp.float32)   # (B, E*H)

        # --- gate-weighted second layer: one bf16 MXU matmul (mean folded in) -
        hg = (h * gate_b).astype(jnp.bfloat16)
        y = jnp.dot(hg, w2_ref[f], preferred_element_type=jnp.float32)       # (B, O_pad)
        # Gate-weighted expert biases (mean folded in): (B,E) @ (E,O_pad), f32.
        y = y + jnp.dot(gate, b2_ref[f], preferred_element_type=jnp.float32)
        acc = acc + y

    out_ref[...] = acc        # 1/num_features already folded into W2 / b2 -> pure store


@jax.jit
def multi_feature_moe(features, wg, bg, w1, b1, w2, b2):
    """features: (F, B, D); params in math (in, out) convention. Returns (B, O) f32."""
    F_, B, D = features.shape
    E = wg.shape[-1]
    H = w1.shape[-1]
    O = w2.shape[-1]
    EH = E * H
    O_pad = ((O + 127) // 128) * 128   # lane-dense output / MXU N occupancy
    # On v6e/v7x at production sizes, pad EH / O_pad to multiples of 256 and
    # tile batch to >=256 rows per step to fill the 2x256^2 MXU.
    inv_f = 1.0 / F_

    # Host-side layout + dtype prep: lane-dense fused weights, bf16 MXU operands.
    x_bf = features.astype(jnp.bfloat16)                                   # (F, B, D)
    wg_bf = wg.astype(jnp.bfloat16)                                        # (F, D, E)
    w1r = jnp.transpose(w1, (0, 2, 1, 3)).reshape(F_, D, EH).astype(jnp.bfloat16)  # (F, D, E*H)
    b1r = b1.reshape(F_, 1, EH)                                            # (F, 1, E*H) f32
    w2r = w2.reshape(F_, EH, O) * inv_f                                    # fold mean
    w2r = jnp.pad(w2r, ((0, 0), (0, 0), (0, O_pad - O))).astype(jnp.bfloat16)  # (F, E*H, O_pad)
    b2r = jnp.pad(b2 * inv_f, ((0, 0), (0, 0), (0, O_pad - O)))            # (F, E, O_pad) f32

    def full(shape):
        return pl.BlockSpec(shape, lambda i, _s=shape: (0,) * len(_s))

    grid_spec = pltpu.PrefetchScalarGridSpec(
        num_scalar_prefetch=0,
        grid=(1,),                              # collapsed grid: one step, no pipeline overhead
        in_specs=[
            full((F_, B, D)),                   # features (bf16)
            full((F_, D, E)),                   # gate W (bf16)
            full((F_, 1, E)),                   # gate b (f32)
            full((F_, D, EH)),                  # fused expert W1 (bf16)
            full((F_, 1, EH)),                  # fused expert b1 (f32)
            full((F_, EH, O_pad)),              # fused expert W2, mean folded (bf16)
            full((F_, E, O_pad)),               # expert b2, mean folded (f32)
        ],
        out_specs=pl.BlockSpec((B, O_pad), lambda i: (0, 0)),
    )

    out = pl.pallas_call(
        moe_kernel,
        out_shape=jax.ShapeDtypeStruct((B, O_pad), jnp.float32),
        grid_spec=grid_spec,
        # For the streamed grid=(F,) production version set vmem_limit_bytes
        # explicitly (budget against 64 MiB on v7x, 16 MiB default scoped on
        # v5e) and add a leading "parallel" batch-tile axis for v7x's 2 TCs.
        compiler_params=pltpu.CompilerParams(
            dimension_semantics=("arbitrary",)),
    )(x_bf, wg_bf, bg, w1r, b1r, w2r, b2r)
    return out[:, :O]


def reference_moe(features, wg, bg, w1, b1, w2, b2):
    """Pure-JAX f32 reference mirroring the PyTorch forward."""
    outs = []
    for f in range(features.shape[0]):
        x = features[f]
        gate = jax.nn.softmax(x @ wg[f] + bg[f, 0], axis=-1)             # (B, E)
        expert_outs = []
        for e in range(w1.shape[1]):
            h = jax.nn.relu(x @ w1[f, e] + b1[f, e])
            expert_outs.append(h @ w2[f, e] + b2[f, e])
        expert_outs = jnp.stack(expert_outs, axis=1)                     # (B, E, O)
        outs.append(jnp.einsum('bn,bno->bo', gate, expert_outs))
    return jnp.mean(jnp.stack(outs, axis=0), axis=0)


if __name__ == "__main__":
    # Small, module-consistent shapes.
    F_ = 3          # num_features
    B = 8           # batch_size
    D = 16          # feature_dim
    E = 4           # num_experts
    H = 32          # expert_hidden_dim  (E*H = 128 -> full lane width)
    O = 16          # output_dim

    key = jax.random.PRNGKey(0)
    ks = jax.random.split(key, 8)

    features = jax.random.normal(ks[0], (F_, B, D), jnp.float32)

    # Deterministic synthetic parameters (math convention: x @ W + b).
    wg = jax.random.normal(ks[1], (F_, D, E), jnp.float32) * (1.0 / jnp.sqrt(D))
    bg = jax.random.normal(ks[2], (F_, 1, E), jnp.float32) * 0.1
    w1 = jax.random.normal(ks[3], (F_, E, D, H), jnp.float32) * (1.0 / jnp.sqrt(D))
    b1 = jax.random.normal(ks[4], (F_, E, H), jnp.float32) * 0.1
    w2 = jax.random.normal(ks[5], (F_, E, H, O), jnp.float32) * (1.0 / jnp.sqrt(H))
    b2 = jax.random.normal(ks[6], (F_, E, O), jnp.float32) * 0.1

    out = multi_feature_moe(features, wg, bg, w1, b1, w2, b2)
    out = jax.block_until_ready(out)

    ref = reference_moe(features, wg, bg, w1, b1, w2, b2)
    assert out.shape == (B, O)
    # Tolerance sized for bf16 MXU operands (f32 accumulation) + approx reciprocal.
    assert jnp.allclose(out, ref, atol=2e-2, rtol=2e-2), "mismatch vs pure-JAX reference"

    print("KERNEL_OK")
</pallas_src>

<mosaic_0001>
module attributes {stable_mosaic.version = 11 : i64} {
  func.func @moe_kernel(%arg0: i32, %arg1: memref<3x8x16xbf16, #tpu.memory_space<vmem>>, %arg2: memref<3x16x4xbf16, #tpu.memory_space<vmem>>, %arg3: memref<3x1x4xf32, #tpu.memory_space<vmem>>, %arg4: memref<3x16x128xbf16, #tpu.memory_space<vmem>>, %arg5: memref<3x1x128xf32, #tpu.memory_space<vmem>>, %arg6: memref<3x128x128xbf16, #tpu.memory_space<vmem>>, %arg7: memref<3x4x128xf32, #tpu.memory_space<vmem>>, %arg8: memref<8x128xf32, #tpu.memory_space<vmem>>) attributes {dimension_semantics = [#tpu.dimension_semantics<arbitrary>], iteration_bounds = array<i64: 1>, scalar_prefetch = 0 : i64, scratch_operands = 0 : i64, tpu.core_type = #tpu.core_type<tc>, window_params = [{pipeline_mode = #tpu.pipeline_mode<synchronous>, transform_indices = @transform_0, window_bounds = array<i64: 3, 8, 16>}, {pipeline_mode = #tpu.pipeline_mode<synchronous>, transform_indices = @transform_1, window_bounds = array<i64: 3, 16, 4>}, {pipeline_mode = #tpu.pipeline_mode<synchronous>, transform_indices = @transform_2, window_bounds = array<i64: 3, 1, 4>}, {pipeline_mode = #tpu.pipeline_mode<synchronous>, transform_indices = @transform_3, window_bounds = array<i64: 3, 16, 128>}, {pipeline_mode = #tpu.pipeline_mode<synchronous>, transform_indices = @transform_4, window_bounds = array<i64: 3, 1, 128>}, {pipeline_mode = #tpu.pipeline_mode<synchronous>, transform_indices = @transform_5, window_bounds = array<i64: 3, 128, 128>}, {pipeline_mode = #tpu.pipeline_mode<synchronous>, transform_indices = @transform_6, window_bounds = array<i64: 3, 4, 128>}, {pipeline_mode = #tpu.pipeline_mode<synchronous>, transform_indices = @transform_7, window_bounds = array<i64: 8, 128>}]} {
    %0 = tpu.iota {dimensions = array<i32: 1>} : vector<4x128xi32>
    %1 = tpu.iota {dimensions = array<i32: 0>} : vector<4x128xi32>
    %c32_i32 = arith.constant 32 : i32
    %2 = vector.broadcast %c32_i32 : i32 to vector<4x128xi32>
    %3 = arith.muli %1, %2 : vector<4x128xi32>
    %4 = arith.cmpi sge, %0, %3 : vector<4x128xi32>
    %c1_i32 = arith.constant 1 : i32
    %5 = vector.broadcast %c1_i32 : i32 to vector<4x128xi32>
    %6 = arith.addi %1, %5 : vector<4x128xi32>
    %c32_i32_0 = arith.constant 32 : i32
    %7 = vector.broadcast %c32_i32_0 : i32 to vector<4x128xi32>
    %8 = arith.muli %6, %7 : vector<4x128xi32>
    %9 = arith.cmpi slt, %0, %8 : vector<4x128xi32>
    %10 = arith.andi %4, %9 : vector<4x128xi1>
    %11 = arith.extui %10 : vector<4x128xi1> to vector<4x128xi32>
    %12 = arith.sitofp %11 : vector<4x128xi32> to vector<4x128xf32>
    %cst = arith.constant 0.000000e+00 : f32
    %13 = vector.broadcast %cst : f32 to vector<8x128xf32>
    %c0 = arith.constant 0 : index
    %c0_1 = arith.constant 0 : index
    %c0_2 = arith.constant 0 : index
    %14 = vector.load %arg1[%c0, %c0_1, %c0_2] : memref<3x8x16xbf16, #tpu.memory_space<vmem>>, vector<1x8x16xbf16>
    %15 = vector.shape_cast %14 : vector<1x8x16xbf16> to vector<8x16xbf16>
    %c0_3 = arith.constant 0 : index
    %c0_4 = arith.constant 0 : index
    %c0_5 = arith.constant 0 : index
    %16 = vector.load %arg2[%c0_3, %c0_4, %c0_5] : memref<3x16x4xbf16, #tpu.memory_space<vmem>>, vector<1x16x4xbf16>
    %17 = vector.shape_cast %16 : vector<1x16x4xbf16> to vector<16x4xbf16>
    %cst_6 = arith.constant dense<0.000000e+00> : vector<8x4xf32>
    %18 = tpu.matmul %15, %17, %cst_6 {dimension_numbers = #tpu.dot_dimension_numbers<[1], [0], [0], [1], [0, 0, 1, 1], [], []>} : vector<8x16xbf16>, vector<16x4xbf16>, vector<8x4xf32> -> vector<8x4xf32>
    %c0_7 = arith.constant 0 : index
    %c0_8 = arith.constant 0 : index
    %c0_9 = arith.constant 0 : index
    %19 = vector.load %arg3[%c0_7, %c0_8, %c0_9] : memref<3x1x4xf32, #tpu.memory_space<vmem>>, vector<1x1x4xf32>
    %20 = vector.shape_cast %19 : vector<1x1x4xf32> to vector<1x4xf32>
    %21 = vector.broadcast %20 : vector<1x4xf32> to vector<8x4xf32>
    %22 = arith.addf %18, %21 : vector<8x4xf32>
    %cst_10 = arith.constant dense<0xFF800000> : vector<8xf32>
    %23 = vector.multi_reduction <maximumf>, %22, %cst_10 [1] : vector<8x4xf32> to vector<8xf32>
    %24 = vector.shape_cast %23 : vector<8xf32> to vector<8x1xf32>
    %25 = vector.broadcast %24 : vector<8x1xf32> to vector<8x4xf32>
    %26 = arith.subf %22, %25 : vector<8x4xf32>
    %27 = math.exp %26 : vector<8x4xf32>
    %cst_11 = arith.constant dense<0.000000e+00> : vector<8xf32>
    %28 = vector.multi_reduction <add>, %27, %cst_11 [1] : vector<8x4xf32> to vector<8xf32>
    %29 = vector.shape_cast %28 : vector<8xf32> to vector<8x1xf32>
    %30 = tpu.reciprocal %29 {approx = true} : vector<8x1xf32> -> vector<8x1xf32>
    %31 = vector.broadcast %30 : vector<8x1xf32> to vector<8x4xf32>
    %32 = arith.mulf %27, %31 : vector<8x4xf32>
    %c0_12 = arith.constant 0 : index
    %c0_13 = arith.constant 0 : index
    %c0_14 = arith.constant 0 : index
    %33 = vector.load %arg4[%c0_12, %c0_13, %c0_14] : memref<3x16x128xbf16, #tpu.memory_space<vmem>>, vector<1x16x128xbf16>
    %34 = vector.shape_cast %33 : vector<1x16x128xbf16> to vector<16x128xbf16>
    %cst_15 = arith.constant dense<0.000000e+00> : vector<8x128xf32>
    %35 = tpu.matmul %15, %34, %cst_15 {dimension_numbers = #tpu.dot_dimension_numbers<[1], [0], [0], [1], [0, 0, 1, 1], [], []>} : vector<8x16xbf16>, vector<16x128xbf16>, vector<8x128xf32> -> vector<8x128xf32>
    %c0_16 = arith.constant 0 : index
    %c0_17 = arith.constant 0 : index
    %c0_18 = arith.constant 0 : index
    %36 = vector.load %arg5[%c0_16, %c0_17, %c0_18] : memref<3x1x128xf32, #tpu.memory_space<vmem>>, vector<1x1x128xf32>
    %37 = vector.shape_cast %36 : vector<1x1x128xf32> to vector<1x128xf32>
    %38 = vector.broadcast %37 : vector<1x128xf32> to vector<8x128xf32>
    %39 = arith.addf %35, %38 : vector<8x128xf32>
    %cst_19 = arith.constant 0.000000e+00 : f32
    %40 = vector.broadcast %cst_19 : f32 to vector<8x128xf32>
    %41 = arith.maximumf %39, %40 : vector<8x128xf32>
    %cst_20 = arith.constant dense<0.000000e+00> : vector<8x128xf32>
    %42 = tpu.matmul %32, %12, %cst_20 {dimension_numbers = #tpu.dot_dimension_numbers<[1], [0], [0], [1], [0, 0, 1, 1], [], []>} : vector<8x4xf32>, vector<4x128xf32>, vector<8x128xf32> -> vector<8x128xf32>
    %43 = arith.mulf %41, %42 : vector<8x128xf32>
    %44 = arith.truncf %43 : vector<8x128xf32> to vector<8x128xbf16>
    %c0_21 = arith.constant 0 : index
    %c0_22 = arith.constant 0 : index
    %c0_23 = arith.constant 0 : index
    %45 = vector.load %arg6[%c0_21, %c0_22, %c0_23] : memref<3x128x128xbf16, #tpu.memory_space<vmem>>, vector<1x128x128xbf16>
    %46 = vector.shape_cast %45 : vector<1x128x128xbf16> to vector<128x128xbf16>
    %cst_24 = arith.constant dense<0.000000e+00> : vector<8x128xf32>
    %47 = tpu.matmul %44, %46, %cst_24 {dimension_numbers = #tpu.dot_dimension_numbers<[1], [0], [0], [1], [0, 0, 1, 1], [], []>} : vector<8x128xbf16>, vector<128x128xbf16>, vector<8x128xf32> -> vector<8x128xf32>
    %c0_25 = arith.constant 0 : index
    %c0_26 = arith.constant 0 : index
    %c0_27 = arith.constant 0 : index
    %48 = vector.load %arg7[%c0_25, %c0_26, %c0_27] : memref<3x4x128xf32, #tpu.memory_space<vmem>>, vector<1x4x128xf32>
    %49 = vector.shape_cast %48 : vector<1x4x128xf32> to vector<4x128xf32>
    %cst_28 = arith.constant dense<0.000000e+00> : vector<8x128xf32>
    %50 = tpu.matmul %32, %49, %cst_28 {dimension_numbers = #tpu.dot_dimension_numbers<[1], [0], [0], [1], [0, 0, 1, 1], [], []>} : vector<8x4xf32>, vector<4x128xf32>, vector<8x128xf32> -> vector<8x128xf32>
    %51 = arith.addf %47, %50 : vector<8x128xf32>
    %52 = arith.addf %13, %51 : vector<8x128xf32>
    %c1 = arith.constant 1 : index
    %c0_29 = arith.constant 0 : index
    %c0_30 = arith.constant 0 : index
    %53 = vector.load %arg1[%c1, %c0_29, %c0_30] : memref<3x8x16xbf16, #tpu.memory_space<vmem>>, vector<1x8x16xbf16>
    %54 = vector.shape_cast %53 : vector<1x8x16xbf16> to vector<8x16xbf16>
    %c1_31 = arith.constant 1 : index
    %c0_32 = arith.constant 0 : index
    %c0_33 = arith.constant 0 : index
    %55 = vector.load %arg2[%c1_31, %c0_32, %c0_33] : memref<3x16x4xbf16, #tpu.memory_space<vmem>>, vector<1x16x4xbf16>
    %56 = vector.shape_cast %55 : vector<1x16x4xbf16> to vector<16x4xbf16>
    %cst_34 = arith.constant dense<0.000000e+00> : vector<8x4xf32>
    %57 = tpu.matmul %54, %56, %cst_34 {dimension_numbers = #tpu.dot_dimension_numbers<[1], [0], [0], [1], [0, 0, 1, 1], [], []>} : vector<8x16xbf16>, vector<16x4xbf16>, vector<8x4xf32> -> vector<8x4xf32>
    %c1_35 = arith.constant 1 : index
    %c0_36 = arith.constant 0 : index
    %c0_37 = arith.constant 0 : index
    %58 = vector.load %arg3[%c1_35, %c0_36, %c0_37] : memref<3x1x4xf32, #tpu.memory_space<vmem>>, vector<1x1x4xf32>
    %59 = vector.shape_cast %58 : vector<1x1x4xf32> to vector<1x4xf32>
    %60 = vector.broadcast %59 : vector<1x4xf32> to vector<8x4xf32>
    %61 = arith.addf %57, %60 : vector<8x4xf32>
    %cst_38 = arith.constant dense<0xFF800000> : vector<8xf32>
    %62 = vector.multi_reduction <maximumf>, %61, %cst_38 [1] : vector<8x4xf32> to vector<8xf32>
    %63 = vector.shape_cast %62 : vector<8xf32> to vector<8x1xf32>
    %64 = vector.broadcast %63 : vector<8x1xf32> to vector<8x4xf32>
    %65 = arith.subf %61, %64 : vector<8x4xf32>
    %66 = math.exp %65 : vector<8x4xf32>
    %cst_39 = arith.constant dense<0.000000e+00> : vector<8xf32>
    %67 = vector.multi_reduction <add>, %66, %cst_39 [1] : vector<8x4xf32> to vector<8xf32>
    %68 = vector.shape_cast %67 : vector<8xf32> to vector<8x1xf32>
    %69 = tpu.reciprocal %68 {approx = true} : vector<8x1xf32> -> vector<8x1xf32>
    %70 = vector.broadcast %69 : vector<8x1xf32> to vector<8x4xf32>
    %71 = arith.mulf %66, %70 : vector<8x4xf32>
    %c1_40 = arith.constant 1 : index
    %c0_41 = arith.constant 0 : index
    %c0_42 = arith.constant 0 : index
    %72 = vector.load %arg4[%c1_40, %c0_41, %c0_42] : memref<3x16x128xbf16, #tpu.memory_space<vmem>>, vector<1x16x128xbf16>
    %73 = vector.shape_cast %72 : vector<1x16x128xbf16> to vector<16x128xbf16>
    %cst_43 = arith.constant dense<0.000000e+00> : vector<8x128xf32>
    %74 = tpu.matmul %54, %73, %cst_43 {dimension_numbers = #tpu.dot_dimension_numbers<[1], [0], [0], [1], [0, 0, 1, 1], [], []>} : vector<8x16xbf16>, vector<16x128xbf16>, vector<8x128xf32> -> vector<8x128xf32>
    %c1_44 = arith.constant 1 : index
    %c0_45 = arith.constant 0 : index
    %c0_46 = arith.constant 0 : index
    %75 = vector.load %arg5[%c1_44, %c0_45, %c0_46] : memref<3x1x128xf32, #tpu.memory_space<vmem>>, vector<1x1x128xf32>
    %76 = vector.shape_cast %75 : vector<1x1x128xf32> to vector<1x128xf32>
    %77 = vector.broadcast %76 : vector<1x128xf32> to vector<8x128xf32>
    %78 = arith.addf %74, %77 : vector<8x128xf32>
    %cst_47 = arith.constant 0.000000e+00 : f32
    %79 = vector.broadcast %cst_47 : f32 to vector<8x128xf32>
    %80 = arith.maximumf %78, %79 : vector<8x128xf32>
    %cst_48 = arith.constant dense<0.000000e+00> : vector<8x128xf32>
    %81 = tpu.matmul %71, %12, %cst_48 {dimension_numbers = #tpu.dot_dimension_numbers<[1], [0], [0], [1], [0, 0, 1, 1], [], []>} : vector<8x4xf32>, vector<4x128xf32>, vector<8x128xf32> -> vector<8x128xf32>
    %82 = arith.mulf %80, %81 : vector<8x128xf32>
    %83 = arith.truncf %82 : vector<8x128xf32> to vector<8x128xbf16>
    %c1_49 = arith.constant 1 : index
    %c0_50 = arith.constant 0 : index
    %c0_51 = arith.constant 0 : index
    %84 = vector.load %arg6[%c1_49, %c0_50, %c0_51] : memref<3x128x128xbf16, #tpu.memory_space<vmem>>, vector<1x128x128xbf16>
    %85 = vector.shape_cast %84 : vector<1x128x128xbf16> to vector<128x128xbf16>
    %cst_52 = arith.constant dense<0.000000e+00> : vector<8x128xf32>
    %86 = tpu.matmul %83, %85, %cst_52 {dimension_numbers = #tpu.dot_dimension_numbers<[1], [0], [0], [1], [0, 0, 1, 1], [], []>} : vector<8x128xbf16>, vector<128x128xbf16>, vector<8x128xf32> -> vector<8x128xf32>
    %c1_53 = arith.constant 1 : index
    %c0_54 = arith.constant 0 : index
    %c0_55 = arith.constant 0 : index
    %87 = vector.load %arg7[%c1_53, %c0_54, %c0_55] : memref<3x4x128xf32, #tpu.memory_space<vmem>>, vector<1x4x128xf32>
    %88 = vector.shape_cast %87 : vector<1x4x128xf32> to vector<4x128xf32>
    %cst_56 = arith.constant dense<0.000000e+00> : vector<8x128xf32>
    %89 = tpu.matmul %71, %88, %cst_56 {dimension_numbers = #tpu.dot_dimension_numbers<[1], [0], [0], [1], [0, 0, 1, 1], [], []>} : vector<8x4xf32>, vector<4x128xf32>, vector<8x128xf32> -> vector<8x128xf32>
    %90 = arith.addf %86, %89 : vector<8x128xf32>
    %91 = arith.addf %52, %90 : vector<8x128xf32>
    %c2 = arith.constant 2 : index
    %c0_57 = arith.constant 0 : index
    %c0_58 = arith.constant 0 : index
    %92 = vector.load %arg1[%c2, %c0_57, %c0_58] : memref<3x8x16xbf16, #tpu.memory_space<vmem>>, vector<1x8x16xbf16>
    %93 = vector.shape_cast %92 : vector<1x8x16xbf16> to vector<8x16xbf16>
    %c2_59 = arith.constant 2 : index
    %c0_60 = arith.constant 0 : index
    %c0_61 = arith.constant 0 : index
    %94 = vector.load %arg2[%c2_59, %c0_60, %c0_61] : memref<3x16x4xbf16, #tpu.memory_space<vmem>>, vector<1x16x4xbf16>
    %95 = vector.shape_cast %94 : vector<1x16x4xbf16> to vector<16x4xbf16>
    %cst_62 = arith.constant dense<0.000000e+00> : vector<8x4xf32>
    %96 = tpu.matmul %93, %95, %cst_62 {dimension_numbers = #tpu.dot_dimension_numbers<[1], [0], [0], [1], [0, 0, 1, 1], [], []>} : vector<8x16xbf16>, vector<16x4xbf16>, vector<8x4xf32> -> vector<8x4xf32>
    %c2_63 = arith.constant 2 : index
    %c0_64 = arith.constant 0 : index
    %c0_65 = arith.constant 0 : index
    %97 = vector.load %arg3[%c2_63, %c0_64, %c0_65] : memref<3x1x4xf32, #tpu.memory_space<vmem>>, vector<1x1x4xf32>
    %98 = vector.shape_cast %97 : vector<1x1x4xf32> to vector<1x4xf32>
    %99 = vector.broadcast %98 : vector<1x4xf32> to vector<8x4xf32>
    %100 = arith.addf %96, %99 : vector<8x4xf32>
    %cst_66 = arith.constant dense<0xFF800000> : vector<8xf32>
    %101 = vector.multi_reduction <maximumf>, %100, %cst_66 [1] : vector<8x4xf32> to vector<8xf32>
    %102 = vector.shape_cast %101 : vector<8xf32> to vector<8x1xf32>
    %103 = vector.broadcast %102 : vector<8x1xf32> to vector<8x4xf32>
    %104 = arith.subf %100, %103 : vector<8x4xf32>
    %105 = math.exp %104 : vector<8x4xf32>
    %cst_67 = arith.constant dense<0.000000e+00> : vector<8xf32>
    %106 = vector.multi_reduction <add>, %105, %cst_67 [1] : vector<8x4xf32> to vector<8xf32>
    %107 = vector.shape_cast %106 : vector<8xf32> to vector<8x1xf32>
    %108 = tpu.reciprocal %107 {approx = true} : vector<8x1xf32> -> vector<8x1xf32>
    %109 = vector.broadcast %108 : vector<8x1xf32> to vector<8x4xf32>
    %110 = arith.mulf %105, %109 : vector<8x4xf32>
    %c2_68 = arith.constant 2 : index
    %c0_69 = arith.constant 0 : index
    %c0_70 = arith.constant 0 : index
    %111 = vector.load %arg4[%c2_68, %c0_69, %c0_70] : memref<3x16x128xbf16, #tpu.memory_space<vmem>>, vector<1x16x128xbf16>
    %112 = vector.shape_cast %111 : vector<1x16x128xbf16> to vector<16x128xbf16>
    %cst_71 = arith.constant dense<0.000000e+00> : vector<8x128xf32>
    %113 = tpu.matmul %93, %112, %cst_71 {dimension_numbers = #tpu.dot_dimension_numbers<[1], [0], [0], [1], [0, 0, 1, 1], [], []>} : vector<8x16xbf16>, vector<16x128xbf16>, vector<8x128xf32> -> vector<8x128xf32>
    %c2_72 = arith.constant 2 : index
    %c0_73 = arith.constant 0 : index
    %c0_74 = arith.constant 0 : index
    %114 = vector.load %arg5[%c2_72, %c0_73, %c0_74] : memref<3x1x128xf32, #tpu.memory_space<vmem>>, vector<1x1x128xf32>
    %115 = vector.shape_cast %114 : vector<1x1x128xf32> to vector<1x128xf32>
    %116 = vector.broadcast %115 : vector<1x128xf32> to vector<8x128xf32>
    %117 = arith.addf %113, %116 : vector<8x128xf32>
    %cst_75 = arith.constant 0.000000e+00 : f32
    %118 = vector.broadcast %cst_75 : f32 to vector<8x128xf32>
    %119 = arith.maximumf %117, %118 : vector<8x128xf32>
    %cst_76 = arith.constant dense<0.000000e+00> : vector<8x128xf32>
    %120 = tpu.matmul %110, %12, %cst_76 {dimension_numbers = #tpu.dot_dimension_numbers<[1], [0], [0], [1], [0, 0, 1, 1], [], []>} : vector<8x4xf32>, vector<4x128xf32>, vector<8x128xf32> -> vector<8x128xf32>
    %121 = arith.mulf %119, %120 : vector<8x128xf32>
    %122 = arith.truncf %121 : vector<8x128xf32> to vector<8x128xbf16>
    %c2_77 = arith.constant 2 : index
    %c0_78 = arith.constant 0 : index
    %c0_79 = arith.constant 0 : index
    %123 = vector.load %arg6[%c2_77, %c0_78, %c0_79] : memref<3x128x128xbf16, #tpu.memory_space<vmem>>, vector<1x128x128xbf16>
    %124 = vector.shape_cast %123 : vector<1x128x128xbf16> to vector<128x128xbf16>
    %cst_80 = arith.constant dense<0.000000e+00> : vector<8x128xf32>
    %125 = tpu.matmul %122, %124, %cst_80 {dimension_numbers = #tpu.dot_dimension_numbers<[1], [0], [0], [1], [0, 0, 1, 1], [], []>} : vector<8x128xbf16>, vector<128x128xbf16>, vector<8x128xf32> -> vector<8x128xf32>
    %c2_81 = arith.constant 2 : index
    %c0_82 = arith.constant 0 : index
    %c0_83 = arith.constant 0 : index
    %126 = vector.load %arg7[%c2_81, %c0_82, %c0_83] : memref<3x4x128xf32, #tpu.memory_space<vmem>>, vector<1x4x128xf32>
    %127 = vector.shape_cast %126 : vector<1x4x128xf32> to vector<4x128xf32>
    %cst_84 = arith.constant dense<0.000000e+00> : vector<8x128xf32>
    %128 = tpu.matmul %110, %127, %cst_84 {dimension_numbers = #tpu.dot_dimension_numbers<[1], [0], [0], [1], [0, 0, 1, 1], [], []>} : vector<8x4xf32>, vector<4x128xf32>, vector<8x128xf32> -> vector<8x128xf32>
    %129 = arith.addf %125, %128 : vector<8x128xf32>
    %130 = arith.addf %91, %129 : vector<8x128xf32>
    %c0_85 = arith.constant 0 : index
    %c0_86 = arith.constant 0 : index
    %131 = vector.load %arg8[%c0_85, %c0_86] : memref<8x128xf32, #tpu.memory_space<vmem>>, vector<8x128xf32>
    tpu.vector_store %arg8[%c0_85, %c0_86], %130 {strides = array<i32>} : memref<8x128xf32, #tpu.memory_space<vmem>>, vector<8x128xf32>,
    return
  }
  func.func @transform_0(%arg0: i32) -> (i32, i32, i32) {
    %c0_i32 = arith.constant 0 : i32
    %c0_i32_0 = arith.constant 0 : i32
    %c0_i32_1 = arith.constant 0 : i32
    %c0_i32_2 = arith.constant 0 : i32
    return %c0_i32, %c0_i32_0, %c0_i32_1 : i32, i32, i32
  }
  func.func @transform_1(%arg0: i32) -> (i32, i32, i32) {
    %c0_i32 = arith.constant 0 : i32
    %c0_i32_0 = arith.constant 0 : i32
    %c0_i32_1 = arith.constant 0 : i32
    %c0_i32_2 = arith.constant 0 : i32
    return %c0_i32, %c0_i32_0, %c0_i32_1 : i32, i32, i32
  }
  func.func @transform_2(%arg0: i32) -> (i32, i32, i32) {
    %c0_i32 = arith.constant 0 : i32
    %c0_i32_0 = arith.constant 0 : i32
    %c0_i32_1 = arith.constant 0 : i32
    %c0_i32_2 = arith.constant 0 : i32
    return %c0_i32, %c0_i32_0, %c0_i32_1 : i32, i32, i32
  }
  func.func @transform_3(%arg0: i32) -> (i32, i32, i32) {
    %c0_i32 = arith.constant 0 : i32
    %c0_i32_0 = arith.constant 0 : i32
    %c0_i32_1 = arith.constant 0 : i32
    %c0_i32_2 = arith.constant 0 : i32
    return %c0_i32, %c0_i32_0, %c0_i32_1 : i32, i32, i32
  }
  func.func @transform_4(%arg0: i32) -> (i32, i32, i32) {
    %c0_i32 = arith.constant 0 : i32
    %c0_i32_0 = arith.constant 0 : i32
    %c0_i32_1 = arith.constant 0 : i32
    %c0_i32_2 = arith.constant 0 : i32
    return %c0_i32, %c0_i32_0, %c0_i32_1 : i32, i32, i32
  }
  func.func @transform_5(%arg0: i32) -> (i32, i32, i32) {
    %c0_i32 = arith.constant 0 : i32
    %c0_i32_0 = arith.constant 0 : i32
    %c0_i32_1 = arith.constant 0 : i32
    %c0_i32_2 = arith.constant 0 : i32
    return %c0_i32, %c0_i32_0, %c0_i32_1 : i32, i32, i32
  }
  func.func @transform_6(%arg0: i32) -> (i32, i32, i32) {
    %c0_i32 = arith.constant 0 : i32
    %c0_i32_0 = arith.constant 0 : i32
    %c0_i32_1 = arith.constant 0 : i32
    %c0_i32_2 = arith.constant 0 : i32
    return %c0_i32, %c0_i32_0, %c0_i32_1 : i32, i32, i32
  }
  func.func @transform_7(%arg0: i32) -> (i32, i32) {
    %c0_i32 = arith.constant 0 : i32
    %c0_i32_0 = arith.constant 0 : i32
    %c0_i32_1 = arith.constant 0 : i32
    return %c0_i32, %c0_i32_0 : i32, i32
  }
}

</mosaic_0001>

<bundles_post_ra>
// kernel: multi_feature_moe.1
= control target key start
LH: loop header
LB: loop body
LE: loop exit
PB: predicated region body
PF: predicated region fallthrough
CT: control target
= control target key end

     0   :  { %v1562_v1 = vmov 0.0   ;;  %vm56_vm0 = vcmask 130048   ;;  %vm1563_vm1 = vmmov 0   ;;  %s1836_s0 = inlined_call_operand.vmem [shape: bf16[3,8,16], index: 0, kind: input, shape index: {}]   ;;  %s1837_s1 = inlined_call_operand.vmem [shape: bf16[3,16,4], index: 1, kind: input, shape index: {}]   ;;  %s1838_s2 = inlined_call_operand.vmem [shape: f32[3,1,4], index: 2, kind: input, shape index: {}]   ;;  %s1839_s3 = inlined_call_operand.vmem [shape: bf16[3,16,128], index: 3, kind: input, shape index: {}]   ;;  %s1840_s4 = inlined_call_operand.vmem [shape: f32[3,1,128], index: 4, kind: input, shape index: {}]   ;;  %s1841_s5 = inlined_call_operand.vmem [shape: bf16[3,128,128], index: 5, kind: input, shape index: {}]   ;;  %s1842_s6 = inlined_call_operand.vmem [shape: f32[3,4,128], index: 6, kind: input, shape index: {}]   ;;  %s1843_s7 = inlined_call_operand.hbm [shape: f32[8,128], index: 7, kind: output, shape index: {}]  }
   0x1   :  { %v1498_v0 = vld [vmem:[%s1837_s1] sm:$0xff]   ;;  %1369 = vmatprep.subr.bf16.mxu0 %v1562_v1  ;;  %1386 = vmatprep.subr.mxu1 %v1562_v1 }
   0x2   :  { %v40_v2 = vld [vmem:[%s1836_s0] sm:$0xf]  ;;  %1370 = vmatpush3.bf16.msra.mxu0 %v1498_v0  ;;  %1371 = vmatprep.mubr.msk.bf16.mxu0 %vm1563_vm1, %v1562_v1 }
   0x3   :  { %1375 = vmatprep.subr.bf16.mxu0 %v1562_v1  ;;  %1388 = vmatprep.mubr.msk.f32.mxu1 %vm1563_vm1, %v1562_v1 }
   0x5   :  { %1372 = vmatmul.mubr.msk.bf16.vlgmr.msra.gmra.mxu0 %vm56_vm0, %v40_v2 }
   0x6   :  { %1377 = vmatprep.mubr.msk.bf16.mxu0 %vm1563_vm1, %v1562_v1 }
   0x7   :  { %12 = vsyncpa [#allocation3], 0  ;;  %v1216_v3 = vld [vmem:[%s1838_s2] ss:$0 sm:$0xff]  ;;  %vm100_vm2 = vcmask 31744   ;;  %v28_v16 = vlaneseq  ;;  %vm171_vm3 = vcmask 1043456  }
   0x8   :  { %v1499_v10 = vld [vmem:[%s1839_s3] sm:$0xff]   ;;  %v1500_v30 = vld [vmem:[%s1841_s5 + $0x38] sm:$0xff]   ;;  %v1501_v32 = vld [vmem:[%s1841_s5 + $0x30] sm:$0xff]  }
   0x9   :  { %1376 = vmatpush3.bf16.msra.mxu0 %v1499_v10  ;;  %v263_v17 = vld [vmem:[%s1842_s6] sm:$0xf]  ;;  %v29_v18 = vand.u32 127, %v28_v16  ;;  %v31_v19 = vshrl.u32 %v28_v16, 7  ;;  %v1502_v33 = vld [vmem:[%s1841_s5 + $0x28] sm:$0xff]   ;;  %v1504_v35 = vld [vmem:[%s1841_s5 + $0x18] sm:$0xff]  }
   0xa   :  { %1381 = vmatprep.subr.mxu0 %v1562_v1  ;;  %1387 = vmatpush3.msk.msra.mxu1 %vm171_vm3, %v263_v17  ;;  %v1503_v34 = vld [vmem:[%s1841_s5 + $0x20] sm:$0xff]   ;;  %v1505_v36 = vld [vmem:[%s1841_s5 + $0x10] sm:$0xff]   ;;  %v1506_v37 = vld [vmem:[%s1841_s5 + $0x8] sm:$0xff]  }
   0xb   :  { %1417 = vmatprep.subr.bf16.mxu1 %v1562_v1  ;;  %v32_v20 = vmul.u32 32, %v31_v19  ;;  %v34_v21 = vadd.s32 1, %v31_v19  ;;  %v1507_v38 = vld [vmem:[%s1841_s5] sm:$0xff]   ;;  %v1508_v47 = vld [vmem:[%s1837_s1 + $0x8] sm:$0xff]   ;;  %v1509_v50 = vld [vmem:[%s1837_s1 + $0x10] sm:$0xff]  }
   0xc   :  { %v1219_v39 = vld [vmem:[%s1840_s4] ss:$0 sm:$0xff]  ;;  %v1234_v49 = vld [vmem:[%s1836_s0 + $0x4] sm:$0xf]  ;;  %v1276_v51 = vld [vmem:[%s1836_s0 + $0x8] sm:$0xf] }
   0xd   :  { %1378 = vmatmul.mubr.msk.bf16.vlgmr.msra.gmra.mxu0 %vm56_vm0, %v40_v2  ;;  %vm33_vm4 = vcmp.ge.s32.totalorder %v29_v18, %v32_v20  ;;  %v35_v22 = vmul.u32 32, %v34_v21  ;;  %v1238_v56 = vld [vmem:[%s1838_s2 + $0x1] ss:$0 sm:$0xff]  ;;  %v1280_v63 = vld [vmem:[%s1838_s2 + $0x2] ss:$0 sm:$0xff] }
   0xe   :  { %1383 = vmatprep.mubr.msk.f32.mxu0 %vm1563_vm1, %v1562_v1 }
   0xf   :  { %vm36_vm5 = vcmp.lt.s32.totalorder %v29_v18, %v35_v22  ;;  %v1511_v18 = vld [vmem:[%s1839_s3 + $0x10] sm:$0xff]  }
  0x10   :  { %vm37_vm6 = vmand %vm33_vm4, %vm36_vm5 }
  0x11   :  { %v1639_v23 = vsel %vm37_vm6, 1.0, %v1562_v1 }
  0x12   :  { %1382 = vmatpush3.msk.msra.mxu0 %vm171_vm3, %v1639_v23 }
  0x13   :  { %1391 = vmatprep.subr.bf16.mxu0 %v1562_v1 }
  0xc5   :  { %v94_v4 = vpop.f32.mrf.mxu0 }
  0xc6   :  { %v95_v5 = vadd.f32 %v1216_v3, %v94_v4 }
  0xc7   :  { %v1373_v6 = vpop.f32.mrf.mxu0 }
  0xc8   :  { %v101_v7 = vsel %vm100_vm2, %v95_v5, -inf }
  0xc9   :  { %102 = vmax.xlane.f32.xlu0 %v101_v7  ;;  %v97_v8 = vpop.f32.mrf.mxu0  ;;  %v1510_v7 = vld [vmem:[%s1839_s3 + $0x8] sm:$0xff]  }
  0xcb   :  { %v1374_v9 = vpop.f32.mrf.mxu0 }
  0xcd   :  { %v161_v24 = vpop.f32.mrf.mxu0 }
  0xce   :  { %v162_v40 = vadd.f32 %v1219_v39, %v161_v24 }
  0xcf   :  { %v1379_v25 = vpop.f32.mrf.mxu0 }
  0xd0   :  { %v167_v41 = vmax.f32 %v162_v40, 0.0 }
  0xd1   :  { %v164_v26 = vpop.f32.mrf.mxu0 }
  0xd3   :  { %v1380_v27 = vpop.f32.mrf.mxu0 }
 0x152   :  { %v103_v11 = vpop.xlane.xlu0 %102 }
 0x153   :  { %v104_v12 = vsub.f32 %v95_v5, %v103_v11 }
 0x155   :  { %v105_v13 = vmul.f32 1.442695, %v104_v12 }
 0x157   :  { %1528 = vpow2.f32 %v105_v13 }
 0x164   :  { %v1529_v14 = vpop.eup %1528 }
 0x165   :  { %v107_v15 = vsel %vm100_vm2, %v1529_v14, 0.0 }
 0x166   :  { %108 = vadd.xlane.f32.xlu0 %v107_v15 }
 0x1ef   :  { %v109_v28 = vpop.xlane.xlu0 %108 }
 0x1f0   :  { %1530 = vrcp.f32 %v109_v28  ;;  %v1265_v28 = vld [vmem:[%s1842_s6 + $0x4] sm:$0xf] }
 0x1fd   :  { %v1531_v29 = vpop.eup %1530 }
 0x1fe   :  { %v111_v31 = vmul.f32 %v1531_v29, %v1529_v14 }
 0x200   :  { %1384 = vmatmul.mubr.msk.f32.vlgmr.msra.gmra.mxu0 %vm100_vm2, %v111_v31  ;;  %1389 = vmatmul.mubr.msk.f32.vlgmr.msra.gmra.mxu1 %vm100_vm2, %v111_v31  ;;  %v1307_v31 = vld [vmem:[%s1842_s6 + $0x8] sm:$0xf] }
 0x201   :  { %1392 = vmatpush3.bf16.msra.mxu0 %v1500_v30  ;;  %1407 = vmatprep.mubr.msk.bf16.mxu0 %vm1563_vm1, %v1562_v1 }
 0x202   :  { %1393 = vmatprep.subr.bf16.mxu0 %v1562_v1  ;;  %1419 = vmatprep.mubr.msk.bf16.mxu1 %vm1563_vm1, %v1562_v1 }
 0x203   :  { %1418 = vmatpush3.bf16.msra.mxu1 %v1510_v7 }
 0x204   :  { %1423 = vmatprep.subr.mxu1 %v1562_v1 }
 0x205   :  { %1394 = vmatpush3.bf16.msra.mxu0 %v1501_v32  ;;  %v1513_v32 = vld [vmem:[%s1841_s5 + $0x70] sm:$0xff]  }
 0x206   :  { %1395 = vmatprep.subr.bf16.mxu0 %v1562_v1  ;;  %1420 = vmatmul.mubr.msk.bf16.vlgmr.msra.gmra.mxu1 %vm56_vm0, %v1234_v49 }
 0x207   :  { %1424 = vmatpush3.msk.msra.mxu1 %vm171_vm3, %v1639_v23  ;;  %1425 = vmatprep.mubr.msk.f32.mxu1 %vm1563_vm1, %v1562_v1 }
 0x208   :  { %1428 = vmatprep.subr.mxu1 %v1562_v1 }
 0x209   :  { %1396 = vmatpush3.bf16.msra.mxu0 %v1502_v33  ;;  %v1514_v33 = vld [vmem:[%s1841_s5 + $0x68] sm:$0xff]  }
 0x20a   :  { %1397 = vmatprep.subr.bf16.mxu0 %v1562_v1 }
 0x20d   :  { %1398 = vmatpush3.bf16.msra.mxu0 %v1503_v34  ;;  %v1515_v34 = vld [vmem:[%s1841_s5 + $0x60] sm:$0xff]  }
 0x20e   :  { %1399 = vmatprep.subr.bf16.mxu0 %v1562_v1 }
 0x211   :  { %1400 = vmatpush3.bf16.msra.mxu0 %v1504_v35  ;;  %v1516_v35 = vld [vmem:[%s1841_s5 + $0x58] sm:$0xff]  }
 0x212   :  { %1401 = vmatprep.subr.bf16.mxu0 %v1562_v1 }
 0x215   :  { %1402 = vmatpush3.bf16.msra.mxu0 %v1505_v36  ;;  %v1517_v36 = vld [vmem:[%s1841_s5 + $0x50] sm:$0xff]  }
 0x216   :  { %1403 = vmatprep.subr.bf16.mxu0 %v1562_v1 }
 0x219   :  { %1404 = vmatpush3.bf16.msra.mxu0 %v1506_v37  ;;  %v1518_v37 = vld [vmem:[%s1841_s5 + $0x48] sm:$0xff]  }
 0x21a   :  { %1405 = vmatprep.subr.bf16.mxu0 %v1562_v1 }
 0x21d   :  { %1406 = vmatpush3.bf16.msra.mxu0 %v1507_v38  ;;  %v1519_v38 = vld [vmem:[%s1841_s5 + $0x40] sm:$0xff]  }
 0x21e   :  { %1411 = vmatprep.subr.bf16.mxu0 %v1562_v1 }
 0x2c0   :  { %v241_v42 = vpop.f32.mrf.mxu0  ;;  %v1685_v43 = vpop.f32.mrf.mxu1 }
 0x2c1   :  { %v245_v44 = vmul.f32 %v241_v42, %v167_v41 }
 0x2c2   :  { %v1385_v45 = vpop.f32.mrf.mxu0  ;;  %v1390_v46 = vpop.f32.mrf.mxu1 }
 0x2c3   :  { %v246_v48 = vpack.c.bf16 %v245_v44, %v245_v44  ;;  %v1244_v44 = vld [vmem:[%s1840_s4 + $0x1] ss:$0 sm:$0xff] }
 0x2c5   :  { %1408 = vmatmul.mubr.bf16.vlgmr.msra.gmra.mxu0 %v246_v48 }
 0x2c6   :  { %1412 = vmatpush3.bf16.msra.mxu0 %v1508_v47  ;;  %1413 = vmatprep.mubr.msk.bf16.mxu0 %vm1563_vm1, %v1562_v1  ;;  %v550_v19 = vpop.f32.mrf.mxu1 }
 0x2c7   :  { %1453 = vmatprep.subr.bf16.mxu0 %v1562_v1  ;;  %v551_v45 = vadd.f32 %v1244_v44, %v550_v19 }
 0x2c8   :  { %v1421_v20 = vpop.f32.mrf.mxu1 }
 0x2c9   :  { %v556_v46 = vmax.f32 %v551_v45, 0.0 }
 0x2ca   :  { %v553_v21 = vpop.f32.mrf.mxu1 }
 0x2cc   :  { %v1422_v22 = vpop.f32.mrf.mxu1 }
 0x2cd   :  { %1414 = vmatmul.mubr.msk.bf16.vlgmr.msra.gmra.mxu0 %vm56_vm0, %v1234_v49 }
 0x2ce   :  { %1454 = vmatpush3.bf16.msra.mxu0 %v1509_v50  ;;  %1455 = vmatprep.mubr.msk.bf16.mxu0 %vm1563_vm1, %v1562_v1  ;;  %v1520_v50 = vld [vmem:[%s1841_s5 + $0xb8] sm:$0xff]  }
 0x2cf   :  { %1459 = vmatprep.subr.bf16.mxu0 %v1562_v1 }
 0x2d5   :  { %1456 = vmatmul.mubr.msk.bf16.vlgmr.msra.gmra.mxu0 %vm56_vm0, %v1276_v51 }
 0x2d6   :  { %1461 = vmatprep.mubr.msk.bf16.mxu0 %vm1563_vm1, %v1562_v1  ;;  %1460 = vmatpush3.bf16.msra.mxu0 %v1511_v18 }
 0x2d7   :  { %1465 = vmatprep.subr.mxu0 %v1562_v1 }
 0x2dd   :  { %1462 = vmatmul.mubr.msk.bf16.vlgmr.msra.gmra.mxu0 %vm56_vm0, %v1276_v51 }
 0x2de   :  { %1466 = vmatpush3.msk.msra.mxu0 %vm171_vm3, %v1639_v23  ;;  %1467 = vmatprep.mubr.msk.f32.mxu0 %vm1563_vm1, %v1562_v1  ;;  %v1512_v23 = vld [vmem:[%s1841_s5 + $0x78] sm:$0xff]  }
 0x2df   :  { %1470 = vmatprep.subr.mxu0 %v1562_v1 }
 0x385   :  { %v1709_v52 = vpop.f32.mrf.mxu0 }
 0x387   :  { %v1409_v53 = vpop.f32.mrf.mxu0 }
 0x389   :  { %v422_v54 = vpop.f32.mrf.mxu0 }
 0x38b   :  { %v1410_v55 = vpop.f32.mrf.mxu0 }
 0x38c   :  { %v1521_v55 = vld [vmem:[%s1841_s5 + $0xb0] sm:$0xff]  }
 0x38d   :  { %v482_v57 = vpop.f32.mrf.mxu0 }
 0x38e   :  { %v483_v58 = vadd.f32 %v1238_v56, %v482_v57 }
 0x38f   :  { %v1415_v59 = vpop.f32.mrf.mxu0 }
 0x390   :  { %v488_v60 = vsel %vm100_vm2, %v483_v58, -inf }
 0x391   :  { %489 = vmax.xlane.f32.xlu1 %v488_v60  ;;  %v485_v61 = vpop.f32.mrf.mxu0 }
 0x392   :  { %v1523_v61 = vld [vmem:[%s1841_s5 + $0xa0] sm:$0xff]  }
 0x393   :  { %v1416_v62 = vpop.f32.mrf.mxu0 }
 0x394   :  { %v1524_v62 = vld [vmem:[%s1841_s5 + $0x98] sm:$0xff]  }
 0x395   :  { %v869_v0 = vpop.f32.mrf.mxu0 }
 0x396   :  { %v870_v2 = vadd.f32 %v1280_v63, %v869_v0  ;;  %v1286_v63 = vld [vmem:[%s1840_s4 + $0x2] ss:$0 sm:$0xff]  ;;  %v1525_v0 = vld [vmem:[%s1841_s5 + $0x90] sm:$0xff]   ;;  %s1564_s4 = smov [#allocation2]  }
 0x397   :  { %v1457_v3 = vpop.f32.mrf.mxu0  ;;  %s1207_s29 = sshll.u32 %s1564_s4, 4  ;;  %s1208_s29 = int_to_ptr.vmem [resolvable:$true] %s1207_s29 }
 0x398   :  { %v875_v4 = vsel %vm100_vm2, %v870_v2, -inf  ;;  %v1526_v3 = vld [vmem:[%s1841_s5 + $0x88] sm:$0xff]   ;;  %p1545_p1 = scmp.lt.s32.totalorder %s1208_s29, %s1208_s29 }
 0x399   :  { %876 = vmax.xlane.f32.xlu1 %v875_v4  ;;  %v872_v5 = vpop.f32.mrf.mxu0 }
 0x39a   :  { %v1527_v5 = vld [vmem:[%s1841_s5 + $0x80] sm:$0xff]  }
 0x39b   :  { %v1458_v6 = vpop.f32.mrf.mxu0 }
 0x39d   :  { %v937_v39 = vpop.f32.mrf.mxu0 }
 0x39f   :  { %v1463_v40 = vpop.f32.mrf.mxu0 }
 0x3a1   :  { %v940_v41 = vpop.f32.mrf.mxu0 }
 0x3a3   :  { %v1464_v42 = vpop.f32.mrf.mxu0 }
 0x41a   :  { %v490_v8 = vpop.xlane.xlu1 %489 }
 0x41b   :  { %v491_v9 = vsub.f32 %v483_v58, %v490_v8  ;;  %v1522_v58 = vld [vmem:[%s1841_s5 + $0xa8] sm:$0xff]   ;;  %s1540_s5 = scalar_lea.vmem %s1208_s29, 128 }
 0x41c   :  { %p1541_p0 = scmp.ne.s32.totalorder %s1208_s29, %s1540_s5  ;;  %p1546_p2 = scmp.lt.s32.totalorder %s1540_s5, %s1540_s5 }
 0x41d   :  { %v492_v10 = vmul.f32 1.442695, %v491_v9 }
 0x41e   :  { %p1547_p3 = por %p1546_p2, %p1545_p1 }
 0x41f   :  { %1532 = vpow2.f32 %v492_v10 }
 0x420   :  { %p1548_p4 = pnand %p1547_p3, %p1541_p0 }
 0x422   :  { %v877_v11 = vpop.xlane.xlu1 %876 }
 0x423   :  { %v878_v12 = vsub.f32 %v870_v2, %v877_v11  ;;  %v938_v2 = vadd.f32 %v1286_v63, %v937_v39 }
 0x425   :  { %v879_v13 = vmul.f32 1.442695, %v878_v12  ;;  %v943_v4 = vmax.f32 %v938_v2, 0.0 }
 0x427   :  { %1534 = vpow2.f32 %v879_v13  ;;  %v420_v13 = vadd.f32 %v1709_v52, %v1685_v43 }
 0x42c   :  { %v1533_v14 = vpop.eup %1532 }
 0x42d   :  { %v494_v15 = vsel %vm100_vm2, %v1533_v14, 0.0 }
 0x42e   :  { %495 = vadd.xlane.f32.xlu0 %v494_v15 }
 0x434   :  { %v1535_v16 = vpop.eup %1534 }
 0x435   :  { %v881_v17 = vsel %vm100_vm2, %v1535_v16, 0.0 }
 0x436   :  { %882 = vadd.xlane.f32.xlu1 %v881_v17 }
 0x4b7   :  { %v496_v24 = vpop.xlane.xlu0 %495 }
 0x4b8   :  { %1536 = vrcp.f32 %v496_v24 }
 0x4bf   :  { %v883_v25 = vpop.xlane.xlu1 %882 }
 0x4c0   :  { %1538 = vrcp.f32 %v883_v25 }
 0x4c5   :  { %v1537_v26 = vpop.eup %1536 }
 0x4c6   :  { %v498_v27 = vmul.f32 %v1537_v26, %v1533_v14 }
 0x4c8   :  { %1426 = vmatmul.mubr.msk.f32.vlgmr.msra.gmra.mxu1 %vm100_vm2, %v498_v27 }
 0x4c9   :  { %1429 = vmatpush3.msk.msra.mxu1 %vm171_vm3, %v1265_v28  ;;  %1430 = vmatprep.mubr.msk.f32.mxu1 %vm1563_vm1, %v1562_v1 }
 0x4ca   :  { %1433 = vmatprep.subr.bf16.mxu1 %v1562_v1 }
 0x4cc   :  { %1431 = vmatmul.mubr.msk.f32.vlgmr.msra.gmra.mxu1 %vm100_vm2, %v498_v27 }
 0x4cd   :  { %v1539_v29 = vpop.eup %1538  ;;  %1434 = vmatpush3.bf16.msra.mxu1 %v1512_v23  ;;  %1449 = vmatprep.mubr.msk.bf16.mxu1 %vm1563_vm1, %v1562_v1 }
 0x4ce   :  { %v885_v30 = vmul.f32 %v1539_v29, %v1535_v16  ;;  %1435 = vmatprep.subr.bf16.mxu1 %v1562_v1 }
 0x4d0   :  { %1468 = vmatmul.mubr.msk.f32.vlgmr.msra.gmra.mxu0 %vm100_vm2, %v885_v30 }
 0x4d1   :  { %1471 = vmatpush3.msk.msra.mxu0 %vm171_vm3, %v1307_v31  ;;  %1472 = vmatprep.mubr.msk.f32.mxu0 %vm1563_vm1, %v1562_v1 }
 0x4d2   :  { %1436 = vmatpush3.bf16.msra.mxu1 %v1513_v32 }
 0x4d3   :  { %1437 = vmatprep.subr.bf16.mxu1 %v1562_v1 }
 0x4d4   :  { %1473 = vmatmul.mubr.msk.f32.vlgmr.msra.gmra.mxu0 %vm100_vm2, %v885_v30 }
 0x4d6   :  { %1438 = vmatpush3.bf16.msra.mxu1 %v1514_v33 }
 0x4d7   :  { %1439 = vmatprep.subr.bf16.mxu1 %v1562_v1 }
 0x4da   :  { %1440 = vmatpush3.bf16.msra.mxu1 %v1515_v34 }
 0x4db   :  { %1441 = vmatprep.subr.bf16.mxu1 %v1562_v1 }
 0x4de   :  { %1442 = vmatpush3.bf16.msra.mxu1 %v1516_v35 }
 0x4df   :  { %1443 = vmatprep.subr.bf16.mxu1 %v1562_v1 }
 0x4e2   :  { %1444 = vmatpush3.bf16.msra.mxu1 %v1517_v36 }
 0x4e3   :  { %1445 = vmatprep.subr.bf16.mxu1 %v1562_v1 }
 0x4e6   :  { %1446 = vmatpush3.bf16.msra.mxu1 %v1518_v37 }
 0x4e7   :  { %1447 = vmatprep.subr.bf16.mxu1 %v1562_v1 }
 0x4ea   :  { %1448 = vmatpush3.bf16.msra.mxu1 %v1519_v38 }
 0x4eb   :  { %1475 = vmatprep.subr.bf16.mxu1 %v1562_v1 }
 0x588   :  { %v626_v47 = vpop.f32.mrf.mxu1 }
 0x589   :  { %v630_v48 = vmul.f32 %v626_v47, %v556_v46 }
 0x58a   :  { %v1427_v49 = vpop.f32.mrf.mxu1 }
 0x58b   :  { %v631_v51 = vpack.c.bf16 %v630_v48, %v630_v48 }
 0x58c   :  { %v720_v53 = vpop.f32.mrf.mxu1 }
 0x58d   :  { %1450 = vmatmul.mubr.bf16.vlgmr.msra.gmra.mxu1 %v631_v51 }
 0x58e   :  { %1476 = vmatpush3.bf16.msra.mxu1 %v1520_v50  ;;  %v1432_v54 = vpop.f32.mrf.mxu1  ;;  %1491 = vmatprep.mubr.msk.bf16.mxu1 %vm1563_vm1, %v1562_v1 }
 0x58f   :  { %1477 = vmatprep.subr.bf16.mxu1 %v1562_v1 }
 0x590   :  { %v1013_v56 = vpop.f32.mrf.mxu0 }
 0x591   :  { %v1017_v6 = vmul.f32 %v1013_v56, %v943_v4 }
 0x592   :  { %1478 = vmatpush3.bf16.msra.mxu1 %v1521_v55  ;;  %v1469_v57 = vpop.f32.mrf.mxu0 }
 0x593   :  { %1479 = vmatprep.subr.bf16.mxu1 %v1562_v1  ;;  %v1018_v7 = vpack.c.bf16 %v1017_v6, %v1017_v6 }
 0x594   :  { %v1107_v59 = vpop.f32.mrf.mxu0 }
 0x596   :  { %1480 = vmatpush3.bf16.msra.mxu1 %v1522_v58  ;;  %v1474_v60 = vpop.f32.mrf.mxu0 }
 0x597   :  { %1481 = vmatprep.subr.bf16.mxu1 %v1562_v1 }
 0x59a   :  { %1482 = vmatpush3.bf16.msra.mxu1 %v1523_v61 }
 0x59b   :  { %1483 = vmatprep.subr.bf16.mxu1 %v1562_v1 }
 0x59e   :  { %1484 = vmatpush3.bf16.msra.mxu1 %v1524_v62 }
 0x59f   :  { %1485 = vmatprep.subr.bf16.mxu1 %v1562_v1 }
 0x5a2   :  { %1486 = vmatpush3.bf16.msra.mxu1 %v1525_v0 }
 0x5a3   :  { %1487 = vmatprep.subr.bf16.mxu1 %v1562_v1 }
 0x5a6   :  { %1488 = vmatpush3.bf16.msra.mxu1 %v1526_v3 }
 0x5a7   :  { %1489 = vmatprep.subr.bf16.mxu1 %v1562_v1 }
 0x5aa   :  { %1490 = vmatpush3.bf16.msra.mxu1 %v1527_v5 }
 0x5ad   :  { %1492 = vmatmul.mubr.bf16.vlgmr.msra.gmra.mxu1 %v1018_v7 }
 0x64d   :  { %v806_v8 = vpop.f32.mrf.mxu1 }
 0x64e   :  { %v807_v12 = vadd.f32 %v806_v8, %v720_v53 }
 0x64f   :  { %v1451_v9 = vpop.f32.mrf.mxu1 }
 0x650   :  { %v812_v15 = vadd.f32 %v807_v12, %v420_v13 }
 0x651   :  { %v809_v10 = vpop.f32.mrf.mxu1 }
 0x653   :  { %v1452_v11 = vpop.f32.mrf.mxu1 }
 0x66d   :  { %v1193_v14 = vpop.f32.mrf.mxu1 }
 0x66e   :  { %v1194_v16 = vadd.f32 %v1193_v14, %v1107_v59 }
 0x66f   :  { %v1493_v17 = vpop.f32.mrf.mxu1 }
 0x670   :  { %v1199_v18 = vadd.f32 %v1194_v16, %v812_v15 }
 0x671   :  { %v1196_v1 = vpop.f32.mrf.mxu1 }
 0x672   :  { %1200 = vst [vmem:[#allocation2] sm:$0xff] %v1199_v18 }
 0x673   :  { %v1494_v19 = vpop.f32.mrf.mxu1 }
 0x674   :  { %1551 = shalt.err (!%p1548_p4)
}
 0x675   :  { %1210 = dma.vmem_to_hbm [thread:$0]  %s1208_s29, 128, %s1843_s7, [#allocation3]  }
 0x676   :  { %1560 = dma.done.wait [#allocation3], 128  }
 0x677   :  { %1561 = vsyncadd [#allocation3], 4294967168 }
 0x678   :  { %1214 = vsyncpa [#allocation3], 1 }

</bundles_post_ra>
